<compile_context>
chip_gen: v5e
topology: v5e:2x2
jax: 0.10.0
libtpu: 0.0.40
codegen_flags: <defaults>
</compile_context>

<pallas_src>
import jax
import jax.numpy as jnp
from jax.experimental import pallas as pl
from jax.experimental.pallas import tpu as pltpu

_LANE = 128
_SUBLANE = 8
_BLOCK_BYTES = 4 * 1024 * 1024  # ~4 MiB/block: 2 arrays x 2 bufs = 16 MiB < v7x scoped VMEM


def _copy_kernel(x_ref, o_ref):
    # Identical (rows, cols) views in and out -> pure passthrough, no reshape.
    o_ref[...] = x_ref[...]


def _lane_dense_view(total):
    """Pick a (rows, cols) 2-D view with cols a large multiple of 128."""
    if total % _LANE:
        return None
    # Prefer a split where rows is also sublane-aligned (enables row tiling).
    for mult in (64, 32, 16, 8, 4, 2, 1):
        cols = _LANE * mult
        if total % cols == 0 and (total // cols) % _SUBLANE == 0:
            return total // cols, cols
    # Otherwise take the widest cols that divides total (single full-array block).
    for mult in (64, 32, 16, 8, 4, 2, 1):
        cols = _LANE * mult
        if total % cols == 0:
            return total // cols, cols
    return None  # unreachable: total % 128 == 0 guarantees mult=1 works


def _pallas_copy_2d(x2d):
    """Lane-dense tiled HBM->HBM copy of a 2-D array via Pallas."""
    rows, cols = x2d.shape
    itemsize = jnp.dtype(x2d.dtype).itemsize
    total_bytes = rows * cols * itemsize

    if total_bytes <= _BLOCK_BYTES or rows % _SUBLANE != 0:
        # Whole array in one grid step (block == full array dims: always legal).
        tile_rows = rows
    else:
        # Largest sublane-aligned divisor of rows that keeps the block <= budget.
        budget_rows = max(_SUBLANE,
                          (_BLOCK_BYTES // (cols * itemsize)) // _SUBLANE * _SUBLANE)
        tile_rows = budget_rows
        while tile_rows > _SUBLANE and rows % tile_rows != 0:
            tile_rows -= _SUBLANE
        if rows % tile_rows != 0:
            tile_rows = rows  # fallback: single full-array block

    grid = (rows // tile_rows,)
    return pl.pallas_call(
        _copy_kernel,
        out_shape=jax.ShapeDtypeStruct((rows, cols), x2d.dtype),
        grid=grid,
        in_specs=[pl.BlockSpec((tile_rows, cols), lambda i: (i, 0))],
        out_specs=pl.BlockSpec((tile_rows, cols), lambda i: (i, 0)),
        compiler_params=pltpu.CompilerParams(
            dimension_semantics=("parallel",)),
    )(x2d)


def unsqueeze(x):
    """Pallas equivalent of UnSqueeze.forward."""
    if x.ndim == 4:
        # Declared null-op in the reference module: zero HBM traffic.
        return x

    if x.ndim != 3:
        raise ValueError(f"expected 3-d or 4-d input, got {x.ndim}-d")

    N, H, W = x.shape
    total = N * H * W

    view = _lane_dense_view(total)
    if view is None:
        # Can't form a 128-multiple last dim; use (N*H, W) — cols equals the
        # full array dim so the BlockSpec stays legal.
        rows, cols = N * H, W
    else:
        rows, cols = view

    # Row-major flatten / unflatten are metadata-only; the copy is the kernel.
    y2d = _pallas_copy_2d(x.reshape(rows, cols))
    return y2d.reshape(N, 1, H, W)


if __name__ == "__main__":
    key = jax.random.PRNGKey(0)
    k3, k4, k5 = jax.random.split(key, 3)

    # 3-d case: (N, H, W) -> (N, 1, H, W)   (total=512 -> lane-dense (1, 512) copy)
    x3 = jax.random.normal(k3, (2, 16, 16), dtype=jnp.float32)
    y3 = jax.block_until_ready(unsqueeze(x3))
    assert y3.shape == (2, 1, 16, 16), y3.shape
    assert jnp.array_equal(y3[:, 0, :, :], x3)

    # 3-d case, wider spatial dims (exercises the sublane-aligned lane-dense view)
    x5 = jax.random.normal(k5, (2, 64, 128), dtype=jnp.float32)
    y5 = jax.block_until_ready(unsqueeze(x5))
    assert y5.shape == (2, 1, 64, 128), y5.shape
    assert jnp.array_equal(y5[:, 0, :, :], x5)

    # 4-d case: identity (null-op, returned unchanged)
    x4 = jax.random.normal(k4, (2, 4, 16, 16), dtype=jnp.float32)
    y4 = jax.block_until_ready(unsqueeze(x4))
    assert y4.shape == (2, 4, 16, 16), y4.shape
    assert jnp.array_equal(y4, x4)

    print("KERNEL_OK")
</pallas_src>

<mosaic_0001>
module attributes {stable_mosaic.version = 11 : i64} {
  func.func @_copy_kernel(%arg0: i32, %arg1: memref<1x512xf32, #tpu.memory_space<vmem>>, %arg2: memref<1x512xf32, #tpu.memory_space<vmem>>) attributes {dimension_semantics = [#tpu.dimension_semantics<parallel>], iteration_bounds = array<i64: 1>, scalar_prefetch = 0 : i64, scratch_operands = 0 : i64, tpu.core_type = #tpu.core_type<tc>, window_params = [{transform_indices = @transform_0, window_bounds = array<i64: 1, 512>}, {transform_indices = @transform_1, window_bounds = array<i64: 1, 512>}]} {
    %c0 = arith.constant 0 : index
    %c0_0 = arith.constant 0 : index
    %0 = vector.load %arg1[%c0, %c0_0] : memref<1x512xf32, #tpu.memory_space<vmem>>, vector<1x512xf32>
    %c0_1 = arith.constant 0 : index
    %c0_2 = arith.constant 0 : index
    %1 = vector.load %arg2[%c0_1, %c0_2] : memref<1x512xf32, #tpu.memory_space<vmem>>, vector<1x512xf32>
    tpu.vector_store %arg2[%c0_1, %c0_2], %0 {strides = array<i32>} : memref<1x512xf32, #tpu.memory_space<vmem>>, vector<1x512xf32>,
    return
  }
  func.func @transform_0(%arg0: i32) -> (i32, i32) {
    %c0_i32 = arith.constant 0 : i32
    %c0_i32_0 = arith.constant 0 : i32
    return %arg0, %c0_i32 : i32, i32
  }
  func.func @transform_1(%arg0: i32) -> (i32, i32) {
    %c0_i32 = arith.constant 0 : i32
    %c0_i32_0 = arith.constant 0 : i32
    return %arg0, %c0_i32 : i32, i32
  }
}

</mosaic_0001>

<bundles_post_ra>
// kernel: tpu_custom_call.1
= control target key start
LH: loop header
LB: loop body
LE: loop exit
PB: predicated region body
PF: predicated region fallthrough
CT: control target
= control target key end

     0   :  { %6 = vsyncpa [#allocation3], 0  ;;  %s118_s0 = inlined_call_operand.hbm [shape: f32[1,512], index: 0, kind: input, shape index: {}]   ;;  %s119_s1 = inlined_call_operand.hbm [shape: f32[1,512], index: 1, kind: output, shape index: {}]  }
   0x1   :  { %7 = vsyncpa [#allocation4], 0  ;;  %s13_s8 = sshll.u32 %s118_s0, 4  ;;  %s100_s9 = smov [#allocation2]   ;;  %s14_s8 = int_to_ptr.hbm [resolvable:$true] %s13_s8 }
   0x2   :  { %s15_s10 = sshll.u32 %s100_s9, 4  ;;  %s16_s10 = int_to_ptr.vmem [resolvable:$true] %s15_s10 }
   0x3   :  { %18 = dma.hbm_to_vmem [thread:$0]  %s14_s8, 64, %s16_s10, [#allocation3]  }
   0x4   :  { %96 = dma.done.wait [#allocation3], 64  }
   0x5   :  { %97 = vsyncadd [#allocation3], 4294967232  ;;  %v24_v0 = vlaneseq  ;;  %s101_s11 = smov [#allocation5]   ;;  %s36_s15 = sshll.u32 %s119_s1, 4  ;;  %v23_v1 = vld [vmem:[#allocation2] sm:$0xf]  ;;  %s37_s15 = int_to_ptr.hbm [resolvable:$true] %s36_s15 }
   0x6   :  { %s34_s12 = sshll.u32 %s101_s11, 4  ;;  %s35_s12 = int_to_ptr.vmem [resolvable:$true] %s34_s12 }
   0x7   :  { %vm26_vm0 = vcmp.lt.s32.totalorder %v24_v0, 512 }
   0x8   :  { %28 = vst.msk [vmem:[#allocation5] sm:$0xf] %vm26_vm0, %v23_v1 }
   0x9   :  { %39 = dma.vmem_to_hbm [thread:$0]  %s35_s12, 64, %s37_s15, [#allocation4]  }
   0xa   :  { %98 = dma.done.wait [#allocation4], 64  }
   0xb   :  { %99 = vsyncadd [#allocation4], 4294967232 }
   0xc   :  { %44 = vsyncpa [#allocation3], 1 }
   0xd   :  { %45 = vsyncpa [#allocation4], 1 }

</bundles_post_ra>
